<compile_context>
chip_gen: v5e
topology: v5e:2x2
jax: 0.10.0
libtpu: 0.0.40
codegen_flags: <defaults>
</compile_context>

<pallas_src>
import functools
import math

import jax
import jax.numpy as jnp
from jax.experimental import pallas as pl
from jax.experimental.pallas import tpu as pltpu


# ---------------------------------------------------------------------------
# Parameter construction (plain JAX "glue", all host/trace-time)
# ---------------------------------------------------------------------------

_JPEG_LUMA_Q = jnp.array(
    [
        [16, 11, 10, 16, 24, 40, 51, 61],
        [12, 12, 14, 19, 26, 58, 60, 55],
        [14, 13, 16, 24, 40, 57, 69, 56],
        [14, 17, 22, 29, 51, 87, 80, 62],
        [18, 22, 37, 56, 68, 109, 103, 77],
        [24, 35, 55, 64, 81, 104, 113, 92],
        [49, 64, 78, 87, 103, 121, 120, 101],
        [72, 92, 95, 98, 112, 100, 103, 99],
    ],
    dtype=jnp.float32,
)


def _dct8_matrix():
    """Orthonormal 8x8 DCT-II matrix D so that DCT(X) = D @ X @ D.T."""
    n = jnp.arange(8, dtype=jnp.float32)
    k = n[:, None]
    d = jnp.cos(math.pi * (2.0 * n[None, :] + 1.0) * k / 16.0)
    scale = jnp.where(k == 0, jnp.sqrt(1.0 / 8.0), jnp.sqrt(2.0 / 8.0))
    return (scale * d).astype(jnp.float32)


def _scaled_quant_table(quality: int):
    q = max(1, min(100, int(quality)))
    scale = 5000.0 / q if q < 50 else 200.0 - 2.0 * q
    qt = jnp.floor((_JPEG_LUMA_Q * scale + 50.0) / 100.0)
    return jnp.clip(qt, 1.0, 255.0).astype(jnp.float32)


def _freq_mask(mode):
    """8x8 DCT-coefficient mask.  None -> keep all; 'mask' -> keep low freqs."""
    if mode is None:
        return jnp.ones((8, 8), dtype=jnp.float32)
    if mode == "mask":
        u = jnp.arange(8)
        return ((u[:, None] + u[None, :]) <= 4).astype(jnp.float32)
    raise ValueError(f"unsupported mode: {mode!r}")


def _round_up(a: int, b: int) -> int:
    return -(-a // b) * b


def _mxu_tile_target() -> int:
    """MXU-native contraction dim: 256 on v6e/v7x, 128 elsewhere (v5e/v5p...)."""
    try:
        kind = jax.devices()[0].device_kind.lower()
        if "v6" in kind or "v7" in kind:
            return 256
        if "tpu" in kind:
            return 128
    except Exception:
        pass
    try:
        name = str(getattr(pltpu.get_tpu_info(), "chip_version", "")).lower()
        if "6" in name or "7" in name:
            return 256
        if name:
            return 128
    except Exception:
        pass
    return 256


def _row_tile(r: int, target: int):
    """(th, padded_R): prefer an exact divisor <= target; pad awkward factors."""
    if r <= target:
        return r, r
    best = 8
    for cand in range(target, 7, -8):
        if r % cand == 0:
            best = cand
            break
    if best >= 64:
        return best, r
    return target, _round_up(r, target)      # pad instead of degenerate tiles


def _lane_tile(cc: int, max_lanes: int = 1024):
    """(TW, padded_CC): lane-dense (multiple of 128) tile, padding if needed."""
    if cc <= 128:
        return cc, cc                         # full-dim block (legal, tiny case)
    ccp = _round_up(cc, 128)
    n128 = ccp // 128
    kmax = min(max_lanes // 128, n128)
    for k in range(kmax, 0, -1):
        if n128 % k == 0:
            return k * 128, ccp
    return 128, ccp


# ---------------------------------------------------------------------------
# Pallas kernel: one (th, TW) tile of the big stacked image per grid step
# ---------------------------------------------------------------------------

def _jpeg_kernel(x_ref, ahf_ref, awf_ref, ahi_ref, awi_ref, invq_ref, qt_ref,
                 std_ref, mean_ref, istd_ref, o_ref, *,
                 apply_norm: bool, n_chunks: int, tw_op: int, mm_dtype):
    x = x_ref[...].astype(jnp.float32)
    if apply_norm:
        x = x * std_ref[...] + mean_ref[...]          # denormalize
    # Center before the (linear) DCT; the x255 pixel scale is folded into awf,
    # so this is equivalent to the classic (255*img - 128) centering.
    xc = jnp.clip(x, 0.0, 1.0) - (128.0 / 255.0)

    ahf = ahf_ref[...]
    awf = awf_ref[...]
    ahi = ahi_ref[...]
    awi = awi_ref[...]
    invq = invq_ref[...]
    qt = qt_ref[...]

    # Left (row) forward DCT over the whole (th, TW) tile: one big matmul.
    t = jnp.dot(ahf, xc.astype(mm_dtype), preferred_element_type=jnp.float32)

    # Right forward DCT + quant/dequant + right inverse DCT per MXU-native lane
    # chunk (statically unrolled; chunk edges are 8x8-block aligned).
    chunks = []
    for c in range(n_chunks):
        sl = slice(c * tw_op, (c + 1) * tw_op)
        coeff = jnp.dot(t[:, sl].astype(mm_dtype), awf,
                        preferred_element_type=jnp.float32)
        cq = jnp.round(coeff * invq) * qt             # mask folded into invq
        chunks.append(jnp.dot(cq.astype(mm_dtype), awi,
                              preferred_element_type=jnp.float32))
    t2 = chunks[0] if n_chunks == 1 else jnp.concatenate(chunks, axis=1)

    # Left inverse DCT over the whole tile (1/255 folded into awi).
    rec = jnp.dot(ahi, t2.astype(mm_dtype), preferred_element_type=jnp.float32)
    out01 = jnp.clip(rec + (128.0 / 255.0), 0.0, 1.0)
    if apply_norm:
        out01 = (out01 - mean_ref[...]) * istd_ref[...]   # renormalize
    o_ref[...] = out01.astype(o_ref.dtype)


# ---------------------------------------------------------------------------
# Wrapper
# ---------------------------------------------------------------------------

def jpeg_compress(x, quality: int = 8, mode=None, mean=None, std=None):
    """JAX/Pallas equivalent of JPEGCompress.forward (NCHW input)."""
    B, C, H, W = x.shape
    assert H % 8 == 0 and W % 8 == 0, "H, W must be multiples of 8"
    orig_dtype = x.dtype
    N = B * C

    # bf16 matmuls only where quantization steps dwarf bf16 rounding error.
    mm_dtype = jnp.bfloat16 if int(quality) < 75 else jnp.float32

    # --- flatten the batch into one big 2-D image (8x8 blocks stay intact) --
    # Narrow images (W < 128) stack along lanes for lane-dense stores; that
    # costs a transpose copy per side, so only when it yields x128 lanes.
    pack_lanes = (W < 128) and (N * W >= 128) and ((N * W) % 128 == 0)
    if pack_lanes:
        big = x.transpose(2, 0, 1, 3).reshape(H, N * W)
    else:
        big = x.reshape(N * H, W)               # free (contiguous) reshape
    R, CC = big.shape

    # --- tile selection ------------------------------------------------------
    target = _mxu_tile_target()                 # 256 (v6e/v7x) or 128 (v5e/v5p)
    th, Rp = _row_tile(R, target)
    tw, CCp = _lane_tile(CC, max_lanes=1024)    # wide, lane-dense output tiles

    # v7x has 2 TensorCores: make sure the parallel grid has >= 2 steps.
    if (Rp // th) * (CCp // tw) < 2:
        half = (th // 2) // 8 * 8
        if half >= 8 and Rp % half == 0:
            th = half
        elif tw >= 256 and tw % 256 == 0:
            tw //= 2

    # Right-DCT operand width: fixed MXU-native size, decoupled from `tw`.
    if tw % target == 0:
        tw_op = target
    elif tw % 128 == 0:
        tw_op = 128
    else:
        tw_op = tw                              # small full-width lane dim
    n_chunks = tw // tw_op

    if (Rp, CCp) != (R, CC):
        big = jnp.pad(big, ((0, Rp - R), (0, CCp - CC)))

    # --- constant operands, built at operand (not image) size ----------------
    d8 = _dct8_matrix()
    a_th = jnp.kron(jnp.eye(th // 8, dtype=jnp.float32), d8)       # (th, th)
    a_tw = jnp.kron(jnp.eye(tw_op // 8, dtype=jnp.float32), d8)    # (tw_op, tw_op)
    ahf = a_th.astype(mm_dtype)                      # fwd left
    awf = (255.0 * a_tw.T).astype(mm_dtype)          # fwd right (x255 folded)
    ahi = a_th.T.astype(mm_dtype)                    # inv left
    awi = (a_tw / 255.0).astype(mm_dtype)            # inv right (1/255 folded)

    qt8 = _scaled_quant_table(quality)
    m8 = _freq_mask(mode)
    reps = (th // 8, tw_op // 8)
    invq_t = jnp.tile(m8 / qt8, reps)                # mask folded into 1/q
    qt_t = jnp.tile(qt8, reps)

    # --- per-row / per-lane (de)normalization factors ------------------------
    apply_norm = (mean is not None) or (std is not None)
    if apply_norm:
        mean_c = (jnp.zeros((C,), jnp.float32) if mean is None
                  else jnp.broadcast_to(jnp.asarray(mean, jnp.float32), (C,)))
        std_c = (jnp.ones((C,), jnp.float32) if std is None
                 else jnp.broadcast_to(jnp.asarray(std, jnp.float32), (C,)))
        istd_c = 1.0 / std_c
        if pack_lanes:
            ch = (jnp.arange(CCp) // W) % C          # channel of each column
            std_v, mean_v, istd_v = (v[ch][None, :] for v in (std_c, mean_c, istd_c))
            nblk, nmap = (1, tw), (lambda i, j: (0, j))
        else:
            ch = (jnp.arange(Rp) // H) % C           # channel of each row
            std_v, mean_v, istd_v = (v[ch][:, None] for v in (std_c, mean_c, istd_c))
            nblk, nmap = (th, 1), (lambda i, j: (i, 0))
    else:
        std_v = mean_v = istd_v = jnp.ones((1, 1), jnp.float32)   # unused dummies
        nblk, nmap = (1, 1), (lambda i, j: (0, 0))

    img_map = lambda i, j: (i, j)
    cst_map = lambda i, j: (0, 0)     # constants: fetched once, reused each step
    # TODO(synk): constants could be single-buffered (pipeline_mode=pl.Buffered(1))
    # to shave ~1 MB of VMEM on v7x; left default-buffered for portability.

    # --- VMEM budget: request the real footprint, not a blanket 48 MiB -------
    io_bytes = jnp.dtype(orig_dtype).itemsize
    mm_bytes = jnp.dtype(mm_dtype).itemsize
    tile = th * tw
    vmem_est = (
        2 * tile * io_bytes                              # input tile (2 bufs)
        + 2 * tile * io_bytes                            # output tile (2 bufs)
        + 2 * 2 * (th * th + tw_op * tw_op) * mm_bytes   # DCT operands
        + 2 * 2 * th * tw_op * 4                         # invq / qt tables
        + 8 * tile * 4                                   # live f32 temporaries
    )
    vmem_limit = int(min(64 << 20, max(16 << 20, 2 * vmem_est)))

    kernel = functools.partial(_jpeg_kernel, apply_norm=apply_norm,
                               n_chunks=n_chunks, tw_op=tw_op, mm_dtype=mm_dtype)

    out_big = pl.pallas_call(
        kernel,
        out_shape=jax.ShapeDtypeStruct((Rp, CCp), orig_dtype),
        grid=(Rp // th, CCp // tw),
        in_specs=[
            pl.BlockSpec((th, tw), img_map),          # image tile (orig dtype)
            pl.BlockSpec((th, th), cst_map),          # AH fwd
            pl.BlockSpec((tw_op, tw_op), cst_map),    # AW fwd (x255)
            pl.BlockSpec((th, th), cst_map),          # AH inv
            pl.BlockSpec((tw_op, tw_op), cst_map),    # AW inv (/255)
            pl.BlockSpec((th, tw_op), cst_map),       # mask/qtab
            pl.BlockSpec((th, tw_op), cst_map),       # qtab
            pl.BlockSpec(nblk, nmap),                 # std
            pl.BlockSpec(nblk, nmap),                 # mean
            pl.BlockSpec(nblk, nmap),                 # 1/std
        ],
        out_specs=pl.BlockSpec((th, tw), img_map),
        compiler_params=pltpu.CompilerParams(
            dimension_semantics=("parallel", "parallel"),
            vmem_limit_bytes=vmem_limit),
    )(big, ahf, awf, ahi, awi, invq_t, qt_t, std_v, mean_v, istd_v)

    out_big = out_big[:R, :CC]
    if pack_lanes:
        out = out_big.reshape(H, B, C, W).transpose(1, 2, 0, 3)
    else:
        out = out_big.reshape(B, C, H, W)
    return out            # already in the input's dtype (no extra cast/copy)


# ---------------------------------------------------------------------------
# Demo
# ---------------------------------------------------------------------------

if __name__ == "__main__":
    key = jax.random.PRNGKey(0)
    k0, k1 = jax.random.split(key)

    # Main example: narrow images -> lane-packed layout, with mean/std.
    B, C, H, W = 2, 4, 16, 16
    x01 = jax.random.uniform(k0, (B, C, H, W), dtype=jnp.float32)
    mean = (0.5,) * C
    std = (0.5,) * C
    x = (x01 - jnp.asarray(mean)[None, :, None, None]) / jnp.asarray(std)[None, :, None, None]

    y = jpeg_compress(x, quality=8, mode=None, mean=mean, std=std)
    jax.block_until_ready(y)
    assert y.shape == x.shape and y.dtype == x.dtype
    assert bool(jnp.all(jnp.isfinite(y)))

    # Row-stacked (W >= 128) layout, "mask" mode, mean/std=None fast path,
    # high quality (f32-matmul path) and bf16 input (orig-dtype kernel I/O).
    x2 = jax.random.uniform(k1, (1, 3, 16, 128), dtype=jnp.float32).astype(jnp.bfloat16)
    y2 = jpeg_compress(x2, quality=90, mode="mask")
    jax.block_until_ready(y2)
    assert y2.shape == x2.shape and y2.dtype == x2.dtype
    assert bool(jnp.all(jnp.isfinite(jnp.asarray(y2, jnp.float32))))

    print("KERNEL_OK")
</pallas_src>

<mosaic_0001>
module attributes {stable_mosaic.version = 11 : i64} {
  func.func @_jpeg_kernel(%arg0: i32, %arg1: i32, %arg2: memref<8x128xf32, #tpu.memory_space<vmem>>, %arg3: memref<8x8xbf16, #tpu.memory_space<vmem>>, %arg4: memref<128x128xbf16, #tpu.memory_space<vmem>>, %arg5: memref<8x8xbf16, #tpu.memory_space<vmem>>, %arg6: memref<128x128xbf16, #tpu.memory_space<vmem>>, %arg7: memref<8x128xf32, #tpu.memory_space<vmem>>, %arg8: memref<8x128xf32, #tpu.memory_space<vmem>>, %arg9: memref<1x128xf32, #tpu.memory_space<vmem>>, %arg10: memref<1x128xf32, #tpu.memory_space<vmem>>, %arg11: memref<1x128xf32, #tpu.memory_space<vmem>>, %arg12: memref<8x128xf32, #tpu.memory_space<vmem>>) attributes {dimension_semantics = [#tpu.dimension_semantics<parallel>, #tpu.dimension_semantics<parallel>], iteration_bounds = array<i64: 2, 1>, scalar_prefetch = 0 : i64, scratch_operands = 0 : i64, tpu.core_type = #tpu.core_type<tc>, window_params = [{transform_indices = @transform_0, window_bounds = array<i64: 8, 128>}, {pipeline_mode = #tpu.pipeline_mode<synchronous>, transform_indices = @transform_1, window_bounds = array<i64: 8, 8>}, {pipeline_mode = #tpu.pipeline_mode<synchronous>, transform_indices = @transform_2, window_bounds = array<i64: 128, 128>}, {pipeline_mode = #tpu.pipeline_mode<synchronous>, transform_indices = @transform_3, window_bounds = array<i64: 8, 8>}, {pipeline_mode = #tpu.pipeline_mode<synchronous>, transform_indices = @transform_4, window_bounds = array<i64: 128, 128>}, {pipeline_mode = #tpu.pipeline_mode<synchronous>, transform_indices = @transform_5, window_bounds = array<i64: 8, 128>}, {pipeline_mode = #tpu.pipeline_mode<synchronous>, transform_indices = @transform_6, window_bounds = array<i64: 8, 128>}, {transform_indices = @transform_7, window_bounds = array<i64: 1, 128>}, {transform_indices = @transform_8, window_bounds = array<i64: 1, 128>}, {transform_indices = @transform_9, window_bounds = array<i64: 1, 128>}, {transform_indices = @transform_10, window_bounds = array<i64: 8, 128>}]} {
    %c0 = arith.constant 0 : index
    %c0_0 = arith.constant 0 : index
    %0 = vector.load %arg2[%c0, %c0_0] : memref<8x128xf32, #tpu.memory_space<vmem>>, vector<8x128xf32>
    %c0_1 = arith.constant 0 : index
    %c0_2 = arith.constant 0 : index
    %1 = vector.load %arg9[%c0_1, %c0_2] : memref<1x128xf32, #tpu.memory_space<vmem>>, vector<1x128xf32>
    %2 = vector.broadcast %1 : vector<1x128xf32> to vector<8x128xf32>
    %3 = arith.mulf %0, %2 : vector<8x128xf32>
    %c0_3 = arith.constant 0 : index
    %c0_4 = arith.constant 0 : index
    %4 = vector.load %arg10[%c0_3, %c0_4] : memref<1x128xf32, #tpu.memory_space<vmem>>, vector<1x128xf32>
    %5 = vector.broadcast %4 : vector<1x128xf32> to vector<8x128xf32>
    %6 = arith.addf %3, %5 : vector<8x128xf32>
    %cst = arith.constant 0.000000e+00 : f32
    %cst_5 = arith.constant 1.000000e+00 : f32
    %7 = vector.broadcast %cst : f32 to vector<8x128xf32>
    %8 = arith.maximumf %7, %6 : vector<8x128xf32>
    %9 = vector.broadcast %cst_5 : f32 to vector<8x128xf32>
    %10 = arith.minimumf %9, %8 : vector<8x128xf32>
    %cst_6 = arith.constant 0.501960814 : f32
    %11 = vector.broadcast %cst_6 : f32 to vector<8x128xf32>
    %12 = arith.subf %10, %11 : vector<8x128xf32>
    %c0_7 = arith.constant 0 : index
    %c0_8 = arith.constant 0 : index
    %13 = vector.load %arg3[%c0_7, %c0_8] : memref<8x8xbf16, #tpu.memory_space<vmem>>, vector<8x8xbf16>
    %c0_9 = arith.constant 0 : index
    %c0_10 = arith.constant 0 : index
    %14 = vector.load %arg4[%c0_9, %c0_10] : memref<128x128xbf16, #tpu.memory_space<vmem>>, vector<128x128xbf16>
    %c0_11 = arith.constant 0 : index
    %c0_12 = arith.constant 0 : index
    %15 = vector.load %arg5[%c0_11, %c0_12] : memref<8x8xbf16, #tpu.memory_space<vmem>>, vector<8x8xbf16>
    %c0_13 = arith.constant 0 : index
    %c0_14 = arith.constant 0 : index
    %16 = vector.load %arg6[%c0_13, %c0_14] : memref<128x128xbf16, #tpu.memory_space<vmem>>, vector<128x128xbf16>
    %c0_15 = arith.constant 0 : index
    %c0_16 = arith.constant 0 : index
    %17 = vector.load %arg7[%c0_15, %c0_16] : memref<8x128xf32, #tpu.memory_space<vmem>>, vector<8x128xf32>
    %c0_17 = arith.constant 0 : index
    %c0_18 = arith.constant 0 : index
    %18 = vector.load %arg8[%c0_17, %c0_18] : memref<8x128xf32, #tpu.memory_space<vmem>>, vector<8x128xf32>
    %19 = arith.truncf %12 : vector<8x128xf32> to vector<8x128xbf16>
    %cst_19 = arith.constant dense<0.000000e+00> : vector<8x128xf32>
    %20 = tpu.matmul %13, %19, %cst_19 {dimension_numbers = #tpu.dot_dimension_numbers<[1], [0], [0], [1], [0, 0, 1, 1], [], []>} : vector<8x8xbf16>, vector<8x128xbf16>, vector<8x128xf32> -> vector<8x128xf32>
    %21 = arith.truncf %20 : vector<8x128xf32> to vector<8x128xbf16>
    %cst_20 = arith.constant dense<0.000000e+00> : vector<8x128xf32>
    %22 = tpu.matmul %21, %14, %cst_20 {dimension_numbers = #tpu.dot_dimension_numbers<[1], [0], [0], [1], [0, 0, 1, 1], [], []>} : vector<8x128xbf16>, vector<128x128xbf16>, vector<8x128xf32> -> vector<8x128xf32>
    %23 = arith.mulf %22, %17 : vector<8x128xf32>
    %24 = math.roundeven %23 : vector<8x128xf32>
    %25 = arith.mulf %24, %18 : vector<8x128xf32>
    %26 = arith.truncf %25 : vector<8x128xf32> to vector<8x128xbf16>
    %cst_21 = arith.constant dense<0.000000e+00> : vector<8x128xf32>
    %27 = tpu.matmul %26, %16, %cst_21 {dimension_numbers = #tpu.dot_dimension_numbers<[1], [0], [0], [1], [0, 0, 1, 1], [], []>} : vector<8x128xbf16>, vector<128x128xbf16>, vector<8x128xf32> -> vector<8x128xf32>
    %28 = arith.truncf %27 : vector<8x128xf32> to vector<8x128xbf16>
    %cst_22 = arith.constant dense<0.000000e+00> : vector<8x128xf32>
    %29 = tpu.matmul %15, %28, %cst_22 {dimension_numbers = #tpu.dot_dimension_numbers<[1], [0], [0], [1], [0, 0, 1, 1], [], []>} : vector<8x8xbf16>, vector<8x128xbf16>, vector<8x128xf32> -> vector<8x128xf32>
    %cst_23 = arith.constant 0.501960814 : f32
    %30 = vector.broadcast %cst_23 : f32 to vector<8x128xf32>
    %31 = arith.addf %29, %30 : vector<8x128xf32>
    %cst_24 = arith.constant 0.000000e+00 : f32
    %cst_25 = arith.constant 1.000000e+00 : f32
    %32 = vector.broadcast %cst_24 : f32 to vector<8x128xf32>
    %33 = arith.maximumf %32, %31 : vector<8x128xf32>
    %34 = vector.broadcast %cst_25 : f32 to vector<8x128xf32>
    %35 = arith.minimumf %34, %33 : vector<8x128xf32>
    %c0_26 = arith.constant 0 : index
    %c0_27 = arith.constant 0 : index
    %36 = vector.load %arg10[%c0_26, %c0_27] : memref<1x128xf32, #tpu.memory_space<vmem>>, vector<1x128xf32>
    %37 = vector.broadcast %36 : vector<1x128xf32> to vector<8x128xf32>
    %38 = arith.subf %35, %37 : vector<8x128xf32>
    %c0_28 = arith.constant 0 : index
    %c0_29 = arith.constant 0 : index
    %39 = vector.load %arg11[%c0_28, %c0_29] : memref<1x128xf32, #tpu.memory_space<vmem>>, vector<1x128xf32>
    %40 = vector.broadcast %39 : vector<1x128xf32> to vector<8x128xf32>
    %41 = arith.mulf %38, %40 : vector<8x128xf32>
    %c0_30 = arith.constant 0 : index
    %c0_31 = arith.constant 0 : index
    %42 = vector.load %arg12[%c0_30, %c0_31] : memref<8x128xf32, #tpu.memory_space<vmem>>, vector<8x128xf32>
    tpu.vector_store %arg12[%c0_30, %c0_31], %41 {strides = array<i32>} : memref<8x128xf32, #tpu.memory_space<vmem>>, vector<8x128xf32>,
    return
  }
  func.func @transform_0(%arg0: i32, %arg1: i32) -> (i32, i32) {
    %c0_i32 = arith.constant 0 : i32
    return %arg0, %arg1 : i32, i32
  }
  func.func @transform_1(%arg0: i32, %arg1: i32) -> (i32, i32) {
    %c0_i32 = arith.constant 0 : i32
    %c0_i32_0 = arith.constant 0 : i32
    %c0_i32_1 = arith.constant 0 : i32
    return %c0_i32, %c0_i32_0 : i32, i32
  }
  func.func @transform_2(%arg0: i32, %arg1: i32) -> (i32, i32) {
    %c0_i32 = arith.constant 0 : i32
    %c0_i32_0 = arith.constant 0 : i32
    %c0_i32_1 = arith.constant 0 : i32
    return %c0_i32, %c0_i32_0 : i32, i32
  }
  func.func @transform_3(%arg0: i32, %arg1: i32) -> (i32, i32) {
    %c0_i32 = arith.constant 0 : i32
    %c0_i32_0 = arith.constant 0 : i32
    %c0_i32_1 = arith.constant 0 : i32
    return %c0_i32, %c0_i32_0 : i32, i32
  }
  func.func @transform_4(%arg0: i32, %arg1: i32) -> (i32, i32) {
    %c0_i32 = arith.constant 0 : i32
    %c0_i32_0 = arith.constant 0 : i32
    %c0_i32_1 = arith.constant 0 : i32
    return %c0_i32, %c0_i32_0 : i32, i32
  }
  func.func @transform_5(%arg0: i32, %arg1: i32) -> (i32, i32) {
    %c0_i32 = arith.constant 0 : i32
    %c0_i32_0 = arith.constant 0 : i32
    %c0_i32_1 = arith.constant 0 : i32
    return %c0_i32, %c0_i32_0 : i32, i32
  }
  func.func @transform_6(%arg0: i32, %arg1: i32) -> (i32, i32) {
    %c0_i32 = arith.constant 0 : i32
    %c0_i32_0 = arith.constant 0 : i32
    %c0_i32_1 = arith.constant 0 : i32
    return %c0_i32, %c0_i32_0 : i32, i32
  }
  func.func @transform_7(%arg0: i32, %arg1: i32) -> (i32, i32) {
    %c0_i32 = arith.constant 0 : i32
    %c0_i32_0 = arith.constant 0 : i32
    return %c0_i32, %arg1 : i32, i32
  }
  func.func @transform_8(%arg0: i32, %arg1: i32) -> (i32, i32) {
    %c0_i32 = arith.constant 0 : i32
    %c0_i32_0 = arith.constant 0 : i32
    return %c0_i32, %arg1 : i32, i32
  }
  func.func @transform_9(%arg0: i32, %arg1: i32) -> (i32, i32) {
    %c0_i32 = arith.constant 0 : i32
    %c0_i32_0 = arith.constant 0 : i32
    return %c0_i32, %arg1 : i32, i32
  }
  func.func @transform_10(%arg0: i32, %arg1: i32) -> (i32, i32) {
    %c0_i32 = arith.constant 0 : i32
    return %arg0, %arg1 : i32, i32
  }
}

</mosaic_0001>

<bundles_post_ra>
// kernel: tpu_custom_call.1
= control target key start
LH: loop header
LB: loop body
LE: loop exit
PB: predicated region body
PF: predicated region fallthrough
CT: control target
= control target key end

     0   :  { %s1763_s0 = inlined_call_operand.hbm [shape: f32[16,128], index: 0, kind: input, shape index: {}]   ;;  %s1764_s1 = inlined_call_operand.hbm [shape: bf16[8,8], index: 1, kind: input, shape index: {}]   ;;  %s1765_s2 = inlined_call_operand.hbm [shape: bf16[128,128], index: 2, kind: input, shape index: {}]   ;;  %s1766_s3 = inlined_call_operand.hbm [shape: bf16[8,8], index: 3, kind: input, shape index: {}]   ;;  %s1767_s4 = inlined_call_operand.hbm [shape: bf16[128,128], index: 4, kind: input, shape index: {}]   ;;  %s1768_s5 = inlined_call_operand.hbm [shape: f32[8,128], index: 5, kind: input, shape index: {}]   ;;  %s1769_s6 = inlined_call_operand.hbm [shape: f32[8,128], index: 6, kind: input, shape index: {}]   ;;  %s1770_s7 = inlined_call_operand.vmem [shape: f32[1,128], index: 7, kind: input, shape index: {}]   ;;  %s1771_s8 = inlined_call_operand.vmem [shape: f32[1,128], index: 8, kind: input, shape index: {}]   ;;  %s1772_s9 = inlined_call_operand.vmem [shape: f32[1,128], index: 9, kind: input, shape index: {}]   ;;  %s1773_s10 = inlined_call_operand.hbm [shape: f32[16,128], index: 10, kind: output, shape index: {}]  }
   0x1   :  { %1775 = sst [smem:[#allocation20_spill]] %s1764_s1 }
   0x2   :  { %1776 = sst [smem:[#allocation21_spill]] %s1765_s2 }
   0x3   :  { %1777 = sst [smem:[#allocation22_spill]] %s1766_s3 }
   0x4   :  { %1778 = sst [smem:[#allocation23_spill]] %s1767_s4 }
   0x5   :  { %15 = vsyncpa [#allocation3], 0 }
   0x6   :  { %17 = vsyncpa [#allocation3 + $0x1], 0 }
   0x7   :  { %18 = vsyncpa [#allocation6], 0 }
   0x8   :  { %19 = vsyncpa [#allocation9], 0 }
   0x9   :  { %20 = vsyncpa [#allocation12], 0 }
   0xa   :  { %21 = vsyncpa [#allocation4], 0 }
   0xb   :  { %23 = vsyncpa [#allocation4 + $0x1], 0  ;;  %s1562_s13 = smov 0   ;;  %s1564_s14 = smov 0  }
   0xc   :  { %s1566_s15 = smov 0   ;;  %s1568_s16 = smov 0  }
   0xd   :  { %s1570_s17 = smov 0   ;;  %s1572_s18 = smov 0  }
   0xe LB: > { %s1774_s19 = sadd.s32 4294967295, %s1497_s18   ;;  %p948_p0 = scmp.ge.s32.totalorder %s1497_s18, 1  ;;  %s1497_s18 = sphi %s1572_s18, %s29_s18   ;;  %s1493_s17 = sphi %s1570_s17, %s1794_s17   ;;  %s1489_s16 = sphi %s1568_s16, %s1793_s16   ;;  %s1485_s15 = sphi %s1566_s15, %s1792_s15   ;;  %s1481_s14 = sphi %s1564_s14, %s1791_s14   ;;  %s1477_s13 = sphi %s1562_s13, %s1790_s13  }
   0xf   : > { %p1596_p1 = scmp.eq.s32.totalorder %s1774_s19, 0  ;;  %p306_p2 = scmp.lt.s32.totalorder %s1497_s18, 3 }
  0x10   : > { %s1780_s1 = sld [smem:[#allocation20_spill]]  ;;  %p958_p4 = scmp.ge.s32.totalorder %s1497_s18, 2 }
  0x11   : > { %p1604_p3 = pnand %p948_p0, %p306_p2  ;;  %s1499_s25 = smov [#allocation5]  }
  0x12   : > { %s320_s26 = sshll.u32 %s1499_s25, 4  ;;  %s1782_s3 = sld [smem:[#allocation22_spill]]  ;;  %s321_s26 = int_to_ptr.vmem [resolvable:$true] %s320_s26 }
  0x13   : > { %p1093_p5 = pneg %p1604_p3  ;;  %s370_s21 = sshll.u32 %s1768_s5, 4  ;;  %s371_s21 = int_to_ptr.hbm [resolvable:$true] %s370_s21 }
  0x14   : > { %s1500_s22 = smov [#allocation8]   ;;  %s1784_s2 = sld [smem:[#allocation21_spill]] }
  0x15   : > { %p1616_p6 = pnand %p1093_p5, %p1596_p1  ;;  %s346_s25 = sshll.u32 %s1500_s22, 4  ;;  %s347_s25 = int_to_ptr.vmem [resolvable:$true] %s346_s25 }
  0x16   : > { %s318_s23 = sshll.u32 %s1780_s1, 4  ;;  %s1501_s1 = smov [#allocation11]   ;;  %s319_s23 = int_to_ptr.hbm [resolvable:$true] %s318_s23 }
  0x17   : > { %1096 = dma.hbm_to_vmem [thread:$0]  (!%p1616_p6), %s319_s23, 64, %s321_s26, [#allocation6]  }
  0x18   : > { %s344_s29 = sshll.u32 %s1782_s3, 4  ;;  %s372_s3 = sshll.u32 %s1501_s1, 4  ;;  %s345_s29 = int_to_ptr.hbm [resolvable:$true] %s344_s29  ;;  %s373_s3 = int_to_ptr.vmem [resolvable:$true] %s372_s3 }
  0x19   : > { %1102 = dma.hbm_to_vmem [thread:$0]  (!%p1616_p6), %s345_s29, 64, %s347_s25, [#allocation9]  }
  0x1a   : > { %s329_s19 = sshll.u32 %s1784_s2, 4  ;;  %s1502_s11 = smov [#allocation7]   ;;  %s330_s19 = int_to_ptr.hbm [resolvable:$true] %s329_s19 }
  0x1b   : > { %1108 = dma.hbm_to_vmem [thread:$0]  (!%p1616_p6), %s371_s21, 128, %s373_s3, [#allocation12]  }
  0x1c   : > { %s331_s12 = sshll.u32 %s1502_s11, 4  ;;  %s1503_s23 = smov 64   ;;  %s332_s12 = int_to_ptr.vmem [resolvable:$true] %s331_s12 }
  0x1d   : > { %s1504_s26 = smov 4   ;;  %s1785_s4 = sld [smem:[#allocation23_spill]] }
  0x1e   : > { %1099 = dma.hbm_to_vmem [thread:$0]  (!%p1616_p6), %s330_s19, 1024, %s332_s12, [#allocation6], %s1503_s23, %s1503_s23, %s1504_s26  }
  0x1f   : > { %s1505_s25 = smov [#allocation10]   ;;  %s382_s28 = sshll.u32 %s1769_s6, 4  ;;  %s383_s28 = int_to_ptr.hbm [resolvable:$true] %s382_s28 }
  0x20   : > { %s357_s3 = sshll.u32 %s1505_s25, 4  ;;  %s1506_s19 = smov [#allocation13]   ;;  %s358_s3 = int_to_ptr.vmem [resolvable:$true] %s357_s3 }
  0x21   : > { %s384_s11 = sshll.u32 %s1506_s19, 4  ;;  %s41_s12 = sadd.s32 1, %s1493_s17  ;;  %s385_s11 = int_to_ptr.vmem [resolvable:$true] %s384_s11 }
  0x22   : > { %1111 = dma.hbm_to_vmem [thread:$0]  (!%p1616_p6), %s383_s28, 128, %s385_s11, [#allocation12]  }
  0x23   : > { %s355_s1 = sshll.u32 %s1785_s4, 4  ;;  %s947_s29 = sadd.s32 4294967294, %s1497_s18   ;;  %s356_s1 = int_to_ptr.hbm [resolvable:$true] %s355_s1 }
  0x24   : > { %1105 = dma.hbm_to_vmem [thread:$0]  (!%p1616_p6), %s356_s1, 1024, %s358_s3, [#allocation9], %s1503_s23, %s1503_s23, %s1504_s26  }
  0x25   : > { %p43_p7 = scmp.ge.s32.totalorder %s41_s12, 2  ;;  %s50_s22 = sadd.s32 1, %s1485_s15 }
  0x26   : > { %p57_p8 = scmp.ne.s32.totalorder %s1485_s15, %s1481_s14  ;;  %p58_p9 = scmp.eq.s32.totalorder %s1497_s18, 0 }
  0x27   : > { %s1796_s12 = smov (%p43_p7, %s41_s12), 0  ;;  %p63_p10 = scmp.ne.s32.totalorder %s1481_s14, %s1477_s13 }
  0x28   : > { %s45_s23 = ssub.s32 %s1493_s17, %s1796_s12  ;;  %s1786_s26 = sadd.s32 4294967295, %s1497_s18  }
  0x29   : > { %p293_p11 = scmp.eq.s32.totalorder %s1786_s26, 1  ;;  %p48_p12 = scmp.eq.s32.totalorder %s45_s23, 0 }
  0x2a   : > { %p1660_p13 = por %p1596_p1, %p63_p10  ;;  %p299_p2 = scmp.eq.s32.totalorder %s947_s29, 1 }
  0x2b   : > { %p1664_p0 = por %p293_p11, %p57_p8  ;;  %p59_p5 = por %p58_p9, %p57_p8 }
  0x2c   : > { %s1669_s25 = scalar_select %p48_p12, %s1485_s15, %s50_s22  }
  0x2d   : > { %p1671_p6 = por %p299_p2, %p63_p10  ;;  %s413_s21 = sand.u32 1, %s1485_s15  }
  0x2e   : > { %s960_s27 = sshll.u32 %s1493_s17, 3  ;;  %p1126_p7 = scmp.lt.s32.totalorder %s1497_s18, 2 }
  0x2f   : > { %s959_s28 = sshll.u32 %s413_s21, 3  ;;  %s422_s23 = scalar_lea.hbm %s1763_s0, %s960_s27 }
  0x30   : > { %s424_s26 = sshll.u32 %s422_s23, 4  ;;  %s417_s2 = scalar_lea.vmem [#allocation2], %s959_s28  ;;  %s425_s26 = int_to_ptr.hbm [resolvable:$true] %s424_s26 }
  0x31   : > { %s426_s4 = sshll.u32 %s417_s2, 4  ;;  %p1113_p11 = pnand %p1126_p7, %p59_p5  ;;  %s427_s4 = int_to_ptr.vmem [resolvable:$true] %s426_s4 }
  0x32   : > { %s414_s29 = scalar_lea.sflag [#allocation3], %s413_s21  ;;  %435 = sbr.rel (%p1604_p3) target bundleno = 632 (0x278), region = 60 }
  0x33   : > { %1115 = dma.hbm_to_vmem [thread:$0]  (!%p1113_p11), %s425_s26, 128, %s427_s4, %s414_s29  }
  0x34   : > { %s1684_s22 = sand.u32 (!%p1604_p3), 1, %s1481_s14  }
  0x35   : > { %s962_s19 = sshll.u32 (!%p1604_p3), %s1684_s22, 3  ;;  %s438_s27 = scalar_lea.sflag (!%p1604_p3), [#allocation3], %s1684_s22 }
  0x36   : > { %s441_s28 = scalar_lea.vmem (!%p1604_p3), [#allocation2], %s962_s19 }
  0x37   : > { %1456 = dma.done.wait (%p1660_p13), %s438_s27, 128  }
  0x38   : > { %1458 = vsyncadd (%p1660_p13), %s438_s27, 4294967168 }
  0x39   : > { %1460 = dma.done.wait (%p1596_p1), [#allocation6], 1088  }
  0x3a   : > { %1462 = vsyncadd (%p1596_p1), [#allocation6], 4294966208 }
  0x3b   : > { %1464 = dma.done.wait (%p1596_p1), [#allocation9], 1088  }
  0x3c   : > { %1466 = vsyncadd (%p1596_p1), [#allocation9], 4294966208 }
  0x3d   : > { %1468 = dma.done.wait (%p1596_p1), [#allocation12], 256  }
  0x3e   : > { %1470 = vsyncadd (%p1596_p1), [#allocation12], 4294967040  ;;  %v528_v0 = vld [vmem:[%s441_s28] sm:$0xff]  ;;  %vm583_vm0 = vcmask 1043456   ;;  %v1045_v12 = vld [vmem:[#allocation7 + $0x20] sm:$0xff]  ;;  %vm579_vm1 = vcmask 64512  }
  0x3f   : > { %v1190_v1 = vld [vmem:[%s1770_s7] ss:$0 sm:$0xff]  ;;  %v1048_v4 = vld [vmem:[#allocation7 + $0x38] sm:$0xff]  ;;  %v1047_v6 = vld [vmem:[#allocation7 + $0x30] sm:$0xff]  ;;  %s1038_s20 = sshll.u32 %s1489_s16, 3  ;;  %s517_s27 = scalar_lea.vmem [#allocation14], %s962_s19 }
  0x40   : > { %v1712_v2 = vld [vmem:[%s1771_s8] ss:$0 sm:$0xff]  ;;  %v533_v3 = vmul.f32 %v1190_v1, %v528_v0  ;;  %649 = vmatpush.bf16.msra.mxu1 %v1048_v4  ;;  %v542_v14 = vld [vmem:[#allocation5] sm:$0xf]  ;;  %v1043_v16 = vld [vmem:[#allocation7 + $0x10] sm:$0xff]  ;;  %s768_s23 = scalar_lea.hbm %s1773_s10, %s1038_s20  ;;  %s770_s28 = sshll.u32 %s517_s27, 4  ;;  %s771_s28 = int_to_ptr.vmem [resolvable:$true] %s770_s28 }
  0x41   : > { %v1046_v9 = vld [vmem:[#allocation7 + $0x28] sm:$0xff]  ;;  %v1044_v15 = vld [vmem:[#allocation7 + $0x18] sm:$0xff]  ;;  %v1041_v18 = vld [vmem:[#allocation7] sm:$0xff]  ;;  %s772_s2 = sshll.u32 %s768_s23, 4  ;;  %s757_s16 = scalar_lea.sflag [#allocation4], %s1684_s22  ;;  %s773_s2 = int_to_ptr.hbm [resolvable:$true] %s772_s2 }
  0x42   : > { %v538_v5 = vadd.f32 %v1712_v2, %v533_v3  ;;  %v1042_v17 = vld [vmem:[#allocation7 + $0x8] sm:$0xff]  ;;  %v1056_v19 = vld [vmem:[#allocation10 + $0x38] sm:$0xff]  ;;  %v1055_v20 = vld [vmem:[#allocation10 + $0x30] sm:$0xff]  ;;  %s1417_s4 = sshra.s32 %s773_s2, 4  ;;  %s1423_s19 = scalar_lea.hbm %s1773_s10, 16  ;;  %s1418_s4 = int_to_ptr.hbm [resolvable:$true] %s1417_s4 }
  0x43   : > { %714 = vmatpush.bf16.msra.mxu2 %v1056_v19  ;;  %v1054_v21 = vld [vmem:[#allocation10 + $0x28] sm:$0xff]  ;;  %v1053_v22 = vld [vmem:[#allocation10 + $0x20] sm:$0xff]  ;;  %v1052_v26 = vld [vmem:[#allocation10 + $0x18] sm:$0xff]  ;;  %s1419_s24 = scalar_lea.hbm %s1418_s4, 8  ;;  %p1424_p9 = scmp.lt.s32.totalorder %s1418_s4, %s1773_s10 }
  0x44   : > { %v539_v7 = vmax.f32 %v538_v5, 0.0  ;;  %650 = vmatpush.bf16.msra.mxu1 %v1047_v6  ;;  %v1051_v27 = vld [vmem:[#allocation10 + $0x10] sm:$0xff]  ;;  %v1050_v28 = vld [vmem:[#allocation10 + $0x8] sm:$0xff]  ;;  %v1049_v29 = vld [vmem:[#allocation10] sm:$0xff]  ;;  %p1420_p1 = scmp.ne.s32.totalorder %s1418_s4, %s1419_s24  ;;  %p1425_p10 = scmp.lt.s32.totalorder %s1423_s19, %s1419_s24 }
  0x45   : > { %v576_v30 = vld [vmem:[#allocation11] sm:$0xff]  ;;  %v577_v39 = vld [vmem:[#allocation13] sm:$0xff]  ;;  %v559_v47 = vld [vmem:[#allocation8] sm:$0xf] }
  0x46   : > { %v540_v8 = vmin.f32 %v539_v7, 1.0  ;;  %v1192_v53 = vld [vmem:[%s1772_s9] ss:$0 sm:$0xff]  ;;  %p1421_p3 = pnand %p1420_p1, %p1664_p0  ;;  %p1426_p12 = por %p1425_p10, %p1424_p9 }
  0x47   : > { %715 = vmatpush.bf16.msra.mxu2 %v1055_v20 }
  0x48   : > { %v970_v10 = vadd.f32 -0.5019608, %v540_v8  ;;  %651 = vmatpush.bf16.msra.mxu1 %v1046_v9  ;;  %p1422_p8 = pneg %p1421_p3 }
  0x4a   : > { %v578_v11 = vpack.c.bf16 %v970_v10, %v970_v10  ;;  %p1427_p13 = pnand %p1426_p12, %p1422_p8 }
  0x4b   : > { %716 = vmatpush.bf16.msra.mxu2 %v1054_v21 }
  0x4c   : > { %v585_v13 = vsel %vm583_vm0, %v578_v11, 0  ;;  %652 = vmatpush.bf16.msra.mxu1 %v1045_v12 }
  0x4d   : > { %594 = vmatpush.bf16.msra.mxu0 %v585_v13 }
  0x4f   : > { %717 = vmatpush.bf16.msra.mxu2 %v1053_v22 }
  0x50   : > { %971 = vmatmul.msk.bf16.vlgmr.msra.gmra.mxu0 %vm579_vm1, %v542_v14  ;;  %653 = vmatpush.bf16.msra.mxu1 %v1044_v15 }
  0x53   : > { %718 = vmatpush.bf16.msra.mxu2 %v1052_v26 }
  0x54   : > { %654 = vmatpush.bf16.msra.mxu1 %v1043_v16 }
  0x57   : > { %719 = vmatpush.bf16.msra.mxu2 %v1051_v27 }
  0x58   : > { %655 = vmatpush.bf16.msra.mxu1 %v1042_v17 }
  0x5b   : > { %720 = vmatpush.bf16.msra.mxu2 %v1050_v28 }
  0x5c   : > { %656 = vmatpush.bf16.msra.mxu1 %v1041_v18 }
  0x5f   : > { %721 = vmatpush.bf16.msra.mxu2 %v1049_v29 }
  0xcd   : > { %v596_v23 = vpop.f32.mrf.mxu0 }
  0xce   : > { %v600_v24 = vpack.c.bf16 %v596_v23, %v596_v23 }
  0xd0   : > { %657 = vmatmul.bf16.vlgmr.msra.gmra.mxu1 %v600_v24 }
  0xd5   : > { %v598_v25 = vpop.f32.mrf.mxu0 }
 0x14d   : > { %v658_v31 = vpop.f32.mrf.mxu1 }
 0x14e   : > { %v662_v32 = vmul.f32 %v658_v31, %v576_v30 }
 0x150   : > { %v1059_v33 = vcvt.f32.s32 %v662_v32  ;;  %v1057_v35 = vand.u32 2147483647, %v662_v32  ;;  %v1062_v36 = vand.u32 2147483648, %v662_v32 }
 0x152   : > { %v1060_v34 = vcvt.s32.f32 %v1059_v33  ;;  %vm1058_vm2 = vcmp.lt.f32.partialorder %v1057_v35, 8388608.0 }
 0x154   : > { %v1061_v37 = vand.u32 2147483647, %v1060_v34 }
 0x155   : > { %v660_v38 = vpop.f32.mrf.mxu1 }
 0x156   : > { %v1063_v40 = vor.u32 %v1062_v36, %v1061_v37 }
 0x158   : > { %v1064_v41 = vsel %vm1058_vm2, %v1063_v40, %v662_v32 }
 0x159   : > { %v664_v42 = vmul.f32 %v1064_v41, %v577_v39 }
 0x15b   : > { %v665_v43 = vpack.c.bf16 %v664_v42, %v664_v42 }
 0x15d   : > { %722 = vmatmul.bf16.vlgmr.msra.gmra.mxu2 %v665_v43 }
 0x1e0   : > { %v723_v44 = vpop.f32.mrf.mxu2 }
 0x1e1   : > { %v727_v45 = vpack.c.bf16 %v723_v44, %v723_v44 }
 0x1e3   : > { %v732_v46 = vsel %vm583_vm0, %v727_v45, 0 }
 0x1e4   : > { %741 = vmatpush.bf16.msra.mxu3 %v732_v46 }
 0x1e7   : > { %1036 = vmatmul.msk.bf16.vlgmr.msra.gmra.mxu3 %vm579_vm1, %v559_v47 }
 0x1e8   : > { %v725_v48 = vpop.f32.mrf.mxu2 }
 0x26a   : > { %v743_v49 = vpop.f32.mrf.mxu3 }
 0x26b   : > { %v744_v50 = vadd.f32 0.5019608, %v743_v49 }
 0x26d   : > { %v747_v51 = vmax.f32 %v744_v50, 0.0 }
 0x26f   : > { %v748_v52 = vmin.f32 %v747_v51, 1.0 }
 0x271   : > { %v749_v54 = vsub.f32 %v748_v52, %v1712_v2 }
 0x272   : > { %v745_v55 = vpop.f32.mrf.mxu3 }
 0x273   : > { %v754_v56 = vmul.f32 %v1192_v53, %v749_v54 }
 0x275   : > { %755 = vst [vmem:[%s517_s27] sm:$0xff] %v754_v56 }
 0x276   : > { %1430 = shalt.err (!%p1427_p13)
}
 0x277   : > { %1091 = dma.vmem_to_hbm [thread:$0]  (%p1664_p0), %s771_s28, 128, %s773_s2, %s757_s16  }
 0x278 PF: > { %s784_s22 = sand.u32 1, %s1477_s13   ;;  %p1117_p2 = pnand %p958_p4, %p1671_p6 }
 0x279   : > { %s785_s23 = scalar_lea.sflag [#allocation4], %s784_s22 }
 0x27a   : > { %p1118_p5 = pneg %p1117_p2 }
 0x27c   : > { %1472 = dma.done.wait (%p1118_p5), %s785_s23, 128  }
 0x27d   : > { %1474 = vsyncadd (%p1118_p5), %s785_s23, 4294967168  ;;  %s29_s18 = sadd.s32 1, %s1497_s18   ;;  %s1790_s13 = smov %s1481_s14 }
 0x27e   : > { %p26_p7 = scmp.ge.s32.totalorder %s29_s18, 4   ;;  %s1791_s14 = smov %s1485_s15 }
 0x27f   : > { %s1792_s15 = smov %s1669_s25  ;;  %s1793_s16 = smov %s1493_s17 }
 0x280   : > { %s1794_s17 = smov %s1796_s12  ;;  %28 = sbr.rel (!%p26_p7) target bundleno = 14 (0xe), region = 138 }
 0x285   :  { %791 = vsyncpa [#allocation3], 1 }
 0x286   :  { %793 = vsyncpa [#allocation3 + $0x1], 1 }
 0x287   :  { %794 = vsyncpa [#allocation6], 1 }
 0x288   :  { %795 = vsyncpa [#allocation9], 1 }
 0x289   :  { %796 = vsyncpa [#allocation12], 1 }
 0x28a   :  { %797 = vsyncpa [#allocation4], 1 }
 0x28b   :  { %799 = vsyncpa [#allocation4 + $0x1], 1 }

</bundles_post_ra>
